<compile_context>
chip_gen: v6e
topology: v6e:2x2x1
jax: 0.10.0
libtpu: 0.0.40
codegen_flags: <defaults>
</compile_context>

<pallas_src>
import functools

import jax
import jax.numpy as jnp
import numpy as np
from jax import lax
from jax.experimental import pallas as pl
from jax.experimental.pallas import tpu as pltpu


def _round_up(n, m=128):
    return ((n + m - 1) // m) * m


def _pick_b_blk(N, hw):
    """Samples packed per grid step: aim for M >= 256 but keep >= 2 grid steps."""
    target = max(1, 256 // max(1, hw))
    b = 1
    for cand in range(1, N + 1):
        if N % cand == 0 and cand <= target:
            b = cand
    if N // b < 2:                       # leave work for both v7x TensorCores
        for cand in range(b, 0, -1):
            if N % cand == 0 and N // cand >= 2:
                b = cand
                break
    return b


def _vmem_limit_bytes(b_blk, h, w, cpf_p, cbig_p):
    m = b_blk * h * w
    in_blk = 2 * b_blk * h * w * cpf_p * 4          # double-buffered f32 input blocks
    out_blk = 2 * m * cbig_p * 4                    # double-buffered f32 output blocks
    weight = 9 * cpf_p * cbig_p * 2 + cbig_p * 4    # single-copy bf16 weight + f32 bias
    halo = b_blk * (h + 2) * (w + 2) * cpf_p * 4    # f32 halo scratch
    temps = 2 * m * cbig_p * 4 + 2 * m * cpf_p * 4  # accumulator / y + slab staging
    need = in_blk + out_blk + weight + halo + temps
    return int(min(128 * 1024 * 1024, max(32 * 1024 * 1024, 2 * need)))


def _level_kernel(x_ref, w_ref, b_ref, o_ref, xs_ref, *, h, w, cpf_p, n_real):
    # x_ref : (b_blk, h, w, cpf_p)        f32  space-to-depth input on the coarse grid,
    #                                          channels ordered (py, px, c) then zero pad
    # w_ref : (9, cpf_p, cbig_p)          bf16 combined tap/phase weight (VMEM-resident)
    # b_ref : (1, cbig_p)                 f32  bias (padded columns are zero)
    # o_ref : (b_blk, h*w, cbig_p)        f32  lane-dense phase-separated output
    # xs_ref: (b_blk, h+2, w+2, cpf_p)    f32  persistent halo scratch
    b_blk = x_ref.shape[0]
    cbig_p = o_ref.shape[-1]

    # Refresh the 1-pixel zero halo with thin border-strip stores (cheap, done every
    # step so the kernel is correct when the "parallel" batch axis is split across
    # the two v7x TensorCores), then overwrite the interior with this step's input.
    zrow = jnp.zeros((b_blk, 1, w + 2, cpf_p), jnp.float32)
    zcol = jnp.zeros((b_blk, h, 1, cpf_p), jnp.float32)
    xs_ref[:, pl.ds(0, 1), :, :] = zrow
    xs_ref[:, pl.ds(h + 1, 1), :, :] = zrow
    xs_ref[:, pl.ds(1, h), pl.ds(0, 1), :] = zcol
    xs_ref[:, pl.ds(1, h), pl.ds(w + 1, 1), :] = zcol
    xs_ref[:, pl.ds(1, h), pl.ds(1, w), :] = x_ref[...]

    # K-split accumulation over the 9 coarse taps: one lane-dense bf16 MXU matmul per
    # tap into an f32 accumulator -- no 9x patches buffer, no lane-axis concat.
    m = b_blk * h * w
    acc = jnp.zeros((m, cbig_p), jnp.float32)
    for t in range(9):
        sy, sx = t // 3, t % 3
        slab = xs_ref[:, pl.ds(sy, h), pl.ds(sx, w), :].reshape(m, cpf_p)
        acc = acc + jnp.dot(slab.astype(jnp.bfloat16), w_ref[t],
                            preferred_element_type=jnp.float32)

    y = acc + b_ref[...]                        # hoisted (1, cbig_p) bias broadcast (f32)
    y = jnp.maximum(y, 0.1 * y)                 # LeakyReLU(0.1), f32 on the VPU
    y = y.reshape(b_blk, h * w, cbig_p)

    # Per-sample LayerNorm over [C, H, W].  Padded output channels are exactly zero
    # before LN (zero weight columns + zero bias -> relu(0) = 0) so they do not
    # perturb the sums; n_real is the real element count per sample.
    s1 = jnp.sum(y, axis=(1, 2), keepdims=True)
    s2 = jnp.sum(y * y, axis=(1, 2), keepdims=True)
    mean = s1 * (1.0 / n_real)
    var = s2 * (1.0 / n_real) - mean * mean
    # (Padded output columns now carry -mean*rsqrt(...); the next level's weight rows
    #  for them are zero, and the final level's padding is sliced off in the wrapper.)
    o_ref[...] = (y - mean) * lax.rsqrt(var + 1e-6)


def _level_forward(x, w_big, b_big, cbig, b_blk):
    # x: (N, h, w, cpf_p) f32  ->  (N, h*w, cbig_p) f32   (phase-separated, lane-dense)
    N, h, w, cpf_p = x.shape
    cbig_p = w_big.shape[-1]
    kernel = functools.partial(_level_kernel, h=h, w=w, cpf_p=cpf_p,
                               n_real=float(h * w * cbig))
    return pl.pallas_call(
        kernel,
        out_shape=jax.ShapeDtypeStruct((N, h * w, cbig_p), jnp.float32),
        grid=(N // b_blk,),
        in_specs=[
            pl.BlockSpec((b_blk, h, w, cpf_p), lambda n: (n, 0, 0, 0)),
            # Grid-invariant weight / bias: whole-array VMEM residents (single copy,
            # not re-fetched or double-buffered across the batch grid).
            pl.BlockSpec(memory_space=pltpu.MemorySpace.VMEM),
            pl.BlockSpec(memory_space=pltpu.MemorySpace.VMEM),
        ],
        out_specs=pl.BlockSpec((b_blk, h * w, cbig_p), lambda n: (n, 0, 0)),
        scratch_shapes=[pltpu.VMEM((b_blk, h + 2, w + 2, cpf_p), jnp.float32)],
        compiler_params=pltpu.CompilerParams(
            dimension_semantics=("parallel",),
            vmem_limit_bytes=_vmem_limit_bytes(b_blk, h, w, cpf_p, cbig_p)),
    )(x, w_big, b_big)


def _build_level_weight_np(wt, bs, f, cpf_p, cbig_p):
    # wt: (cin, cout, 4, 4) numpy f32 ConvTranspose2d weight; bs: (cout,) bias.
    # Input is stored space-to-depth at factor f on the coarse grid:
    #   x_full[f*m0 + py, f*j0 + px, c] = stored[m0, j0, (py, px, c)]
    # Output at factor 2f: y_full[2f*m0 + PY, ...] = out[m0, j0, (PY, PX, oc)], PY = 2py+ry.
    # Returns a (9, cpf_p, cbig_p) bf16 weight (zero-padded rows/cols) and (1, cbig_p)
    # f32 bias so that  out = sum_t slab_t @ W[t]  over the 9 shifted slabs of the
    # zero-haloed coarse input.
    cin, cout = wt.shape[0], wt.shape[1]
    cpf, cbig = f * f * cin, 4 * f * f * cout
    W = np.zeros((3, 3, f, f, cin, 2 * f, 2 * f, cout), np.float32)

    def coarse(t):
        # full-res offset t (relative to f*m0) -> (slab index in {0,1,2}, phase)
        if t == -1:
            return 0, f - 1
        if t == f:
            return 2, 0
        return 1, t

    for py in range(f):
        for ry in range(2):
            for a in range(2):
                sy, by = coarse(py + ry + a - 1)
                ky = 3 - ry - 2 * a
                for px in range(f):
                    for rx in range(2):
                        for b in range(2):
                            sx, bx = coarse(px + rx + b - 1)
                            kx = 3 - rx - 2 * b
                            W[sy, sx, by, bx, :, 2 * py + ry, 2 * px + rx, :] = wt[:, :, ky, kx]

    W = W.reshape(9, cpf, cbig)
    Wp = np.zeros((9, cpf_p, cbig_p), np.float32)
    Wp[:, :cpf, :cbig] = W
    bp = np.zeros((1, cbig_p), np.float32)
    bp[0, :cbig] = np.tile(np.asarray(bs, np.float32), 4 * f * f)
    return jnp.asarray(Wp, jnp.bfloat16), jnp.asarray(bp, jnp.float32)


def prepare_params(params):
    """Host-side (numpy) parameter prep: combined bf16 weights, padded f32 bias."""
    prepared = []
    f = 1
    for wt, bs in params:
        wt_np = np.asarray(wt, np.float32)
        bs_np = np.asarray(bs, np.float32)
        cout = wt_np.shape[1]
        cpf_p = _round_up(f * f * wt_np.shape[0])
        cbig = 4 * f * f * cout
        cbig_p = _round_up(cbig)
        w_big, b_big = _build_level_weight_np(wt_np, bs_np, f, cpf_p, cbig_p)
        prepared.append((w_big, b_big, cbig, cout))
        f *= 2
    return prepared


def init_params(key, in_channels, n_levels):
    params = []
    for i in range(n_levels):
        cin = in_channels // (2 ** i)
        cout = in_channels // (2 ** (i + 1))
        key, k1, k2 = jax.random.split(key, 3)
        bound = 1.0 / np.sqrt(cout * 16)
        wt = jax.random.uniform(k1, (cin, cout, 4, 4), jnp.float32, -bound, bound)
        bs = jax.random.uniform(k2, (cout,), jnp.float32, -bound, bound)
        params.append((wt, bs))
    return params


def pyramidal_up_convs(x_nchw, prepared):
    N, C, h0, w0 = x_nchw.shape
    x = jnp.transpose(x_nchw, (0, 2, 3, 1)).astype(jnp.float32)   # NCHW -> NHWC coarse grid
    cpf_p0 = _round_up(C)
    if cpf_p0 != C:                                               # lane-pad small channel dims
        x = jnp.pad(x, ((0, 0), (0, 0), (0, 0), (0, cpf_p0 - C)))
    b_blk = _pick_b_blk(N, h0 * w0)
    f = 1
    c_last, cbig_last = C, C
    for w_big, b_big, cbig, cout in prepared:
        x = _level_forward(x, w_big, b_big, cbig, b_blk)          # (N, h0*w0, cbig_p)
        x = x.reshape(N, h0, w0, -1)                              # contiguous reshape (free)
        f *= 2
        c_last, cbig_last = cout, cbig
    # single de-interleave at the very end (drop channel padding first):
    F = f
    y = x[..., :cbig_last].reshape(N, h0, w0, F, F, c_last)
    y = y.transpose(0, 1, 3, 2, 4, 5).reshape(N, h0 * F, w0 * F, c_last)
    return jnp.transpose(y, (0, 3, 1, 2))                         # NHWC -> NCHW


def _reference(x_nchw, params):
    # pure-JAX f32 reference (transposed conv via lhs-dilated conv) for verification
    x = x_nchw
    for wt, bs in params:
        w_conv = jnp.flip(wt, axis=(2, 3)).transpose(1, 0, 2, 3)   # (cout, cin, 4, 4)
        x = lax.conv_general_dilated(
            x, w_conv, window_strides=(1, 1), padding=((2, 2), (2, 2)),
            lhs_dilation=(2, 2), dimension_numbers=("NCHW", "OIHW", "NCHW"))
        x = x + bs[None, :, None, None]
        x = jnp.where(x > 0, x, 0.1 * x)
        mean = jnp.mean(x, axis=(1, 2, 3), keepdims=True)
        var = jnp.mean((x - mean) ** 2, axis=(1, 2, 3), keepdims=True)
        x = (x - mean) * lax.rsqrt(var + 1e-6)
    return x


if __name__ == "__main__":
    def _run_case(N, in_channels, n_levels, img_size, seed):
        h0 = img_size // (2 ** n_levels)                          # coarse (input) spatial size
        key = jax.random.PRNGKey(seed)
        key, kx = jax.random.split(key)
        x = jax.random.normal(kx, (N, in_channels, h0, h0), jnp.float32)
        params = init_params(key, in_channels, n_levels)
        prepared = prepare_params(params)
        out = jax.block_until_ready(pyramidal_up_convs(x, prepared))
        assert out.shape == (N, in_channels // 2 ** n_levels, img_size, img_size)
        ref = _reference(x, params)
        # bf16 MXU operands (weights + activations) vs. the all-f32 reference: allow a
        # modestly wider tolerance than pure f32 (errors are ~0.3-0.7% after LayerNorm).
        np.testing.assert_allclose(np.asarray(out), np.asarray(ref), atol=2e-2, rtol=2e-2)

    _run_case(N=2, in_channels=16, n_levels=2, img_size=16, seed=0)   # b_blk=1, grid=(2,)
    _run_case(N=4, in_channels=8, n_levels=1, img_size=8, seed=1)     # b_blk=2, grid=(2,)
    print("KERNEL_OK")
</pallas_src>

<mosaic_0001>
module attributes {stable_mosaic.version = 11 : i64} {
  func.func @_level_kernel(%arg0: i32, %arg1: memref<1x4x4x128xf32, #tpu.memory_space<vmem>>, %arg2: memref<9x128x128xbf16, #tpu.memory_space<vmem>>, %arg3: memref<1x128xf32, #tpu.memory_space<vmem>>, %arg4: memref<1x16x128xf32, #tpu.memory_space<vmem>>, %arg5: memref<1x6x6x128xf32, #tpu.memory_space<vmem>>) attributes {dimension_semantics = [#tpu.dimension_semantics<parallel>], iteration_bounds = array<i64: 2>, scalar_prefetch = 0 : i64, scratch_operands = 1 : i64, tpu.core_type = #tpu.core_type<tc>, window_params = [{transform_indices = @transform_0, window_bounds = array<i64: 1, 4, 4, 128>}, {pipeline_mode = #tpu.pipeline_mode<synchronous>, transform_indices = @transform_1, window_bounds = array<i64: 9, 128, 128>}, {pipeline_mode = #tpu.pipeline_mode<synchronous>, transform_indices = @transform_2, window_bounds = array<i64: 1, 128>}, {transform_indices = @transform_3, window_bounds = array<i64: 1, 16, 128>}]} {
    %cst = arith.constant 0.000000e+00 : f32
    %0 = vector.broadcast %cst : f32 to vector<1x1x6x128xf32>
    %cst_0 = arith.constant 0.000000e+00 : f32
    %1 = vector.broadcast %cst_0 : f32 to vector<1x4x1x128xf32>
    %c0 = arith.constant 0 : index
    %c0_1 = arith.constant 0 : index
    %c0_2 = arith.constant 0 : index
    %c0_3 = arith.constant 0 : index
    %2 = vector.load %arg5[%c0, %c0_1, %c0_2, %c0_3] : memref<1x6x6x128xf32, #tpu.memory_space<vmem>>, vector<1x1x6x128xf32>
    tpu.vector_store %arg5[%c0, %c0_1, %c0_2, %c0_3], %0 {strides = array<i32>} : memref<1x6x6x128xf32, #tpu.memory_space<vmem>>, vector<1x1x6x128xf32>,
    %c0_4 = arith.constant 0 : index
    %c5 = arith.constant 5 : index
    %c0_5 = arith.constant 0 : index
    %c0_6 = arith.constant 0 : index
    %3 = vector.load %arg5[%c0_4, %c5, %c0_5, %c0_6] : memref<1x6x6x128xf32, #tpu.memory_space<vmem>>, vector<1x1x6x128xf32>
    tpu.vector_store %arg5[%c0_4, %c5, %c0_5, %c0_6], %0 {strides = array<i32>} : memref<1x6x6x128xf32, #tpu.memory_space<vmem>>, vector<1x1x6x128xf32>,
    %c0_7 = arith.constant 0 : index
    %c1 = arith.constant 1 : index
    %c0_8 = arith.constant 0 : index
    %c0_9 = arith.constant 0 : index
    %4 = vector.load %arg5[%c0_7, %c1, %c0_8, %c0_9] : memref<1x6x6x128xf32, #tpu.memory_space<vmem>>, vector<1x4x1x128xf32>
    tpu.vector_store %arg5[%c0_7, %c1, %c0_8, %c0_9], %1 {strides = array<i32>} : memref<1x6x6x128xf32, #tpu.memory_space<vmem>>, vector<1x4x1x128xf32>,
    %c0_10 = arith.constant 0 : index
    %c1_11 = arith.constant 1 : index
    %c5_12 = arith.constant 5 : index
    %c0_13 = arith.constant 0 : index
    %5 = vector.load %arg5[%c0_10, %c1_11, %c5_12, %c0_13] : memref<1x6x6x128xf32, #tpu.memory_space<vmem>>, vector<1x4x1x128xf32>
    tpu.vector_store %arg5[%c0_10, %c1_11, %c5_12, %c0_13], %1 {strides = array<i32>} : memref<1x6x6x128xf32, #tpu.memory_space<vmem>>, vector<1x4x1x128xf32>,
    %c0_14 = arith.constant 0 : index
    %c0_15 = arith.constant 0 : index
    %c0_16 = arith.constant 0 : index
    %c0_17 = arith.constant 0 : index
    %6 = vector.load %arg1[%c0_14, %c0_15, %c0_16, %c0_17] : memref<1x4x4x128xf32, #tpu.memory_space<vmem>>, vector<1x4x4x128xf32>
    %c0_18 = arith.constant 0 : index
    %c1_19 = arith.constant 1 : index
    %c1_20 = arith.constant 1 : index
    %c0_21 = arith.constant 0 : index
    %7 = vector.load %arg5[%c0_18, %c1_19, %c1_20, %c0_21] : memref<1x6x6x128xf32, #tpu.memory_space<vmem>>, vector<1x4x4x128xf32>
    tpu.vector_store %arg5[%c0_18, %c1_19, %c1_20, %c0_21], %6 {strides = array<i32>} : memref<1x6x6x128xf32, #tpu.memory_space<vmem>>, vector<1x4x4x128xf32>,
    %cst_22 = arith.constant 0.000000e+00 : f32
    %8 = vector.broadcast %cst_22 : f32 to vector<16x128xf32>
    %c0_23 = arith.constant 0 : index
    %c0_24 = arith.constant 0 : index
    %c0_25 = arith.constant 0 : index
    %c0_26 = arith.constant 0 : index
    %9 = vector.load %arg5[%c0_23, %c0_24, %c0_25, %c0_26] : memref<1x6x6x128xf32, #tpu.memory_space<vmem>>, vector<1x4x4x128xf32>
    %10 = vector.shape_cast %9 : vector<1x4x4x128xf32> to vector<16x128xf32>
    %11 = arith.truncf %10 : vector<16x128xf32> to vector<16x128xbf16>
    %c0_27 = arith.constant 0 : index
    %c0_28 = arith.constant 0 : index
    %c0_29 = arith.constant 0 : index
    %12 = vector.load %arg2[%c0_27, %c0_28, %c0_29] : memref<9x128x128xbf16, #tpu.memory_space<vmem>>, vector<1x128x128xbf16>
    %13 = vector.shape_cast %12 : vector<1x128x128xbf16> to vector<128x128xbf16>
    %cst_30 = arith.constant dense<0.000000e+00> : vector<16x128xf32>
    %14 = tpu.matmul %11, %13, %cst_30 {dimension_numbers = #tpu.dot_dimension_numbers<[1], [0], [0], [1], [0, 0, 1, 1], [], []>} : vector<16x128xbf16>, vector<128x128xbf16>, vector<16x128xf32> -> vector<16x128xf32>
    %15 = arith.addf %8, %14 : vector<16x128xf32>
    %c0_31 = arith.constant 0 : index
    %c0_32 = arith.constant 0 : index
    %c1_33 = arith.constant 1 : index
    %c0_34 = arith.constant 0 : index
    %16 = vector.load %arg5[%c0_31, %c0_32, %c1_33, %c0_34] : memref<1x6x6x128xf32, #tpu.memory_space<vmem>>, vector<1x4x4x128xf32>
    %17 = vector.shape_cast %16 : vector<1x4x4x128xf32> to vector<16x128xf32>
    %18 = arith.truncf %17 : vector<16x128xf32> to vector<16x128xbf16>
    %c1_35 = arith.constant 1 : index
    %c0_36 = arith.constant 0 : index
    %c0_37 = arith.constant 0 : index
    %19 = vector.load %arg2[%c1_35, %c0_36, %c0_37] : memref<9x128x128xbf16, #tpu.memory_space<vmem>>, vector<1x128x128xbf16>
    %20 = vector.shape_cast %19 : vector<1x128x128xbf16> to vector<128x128xbf16>
    %cst_38 = arith.constant dense<0.000000e+00> : vector<16x128xf32>
    %21 = tpu.matmul %18, %20, %cst_38 {dimension_numbers = #tpu.dot_dimension_numbers<[1], [0], [0], [1], [0, 0, 1, 1], [], []>} : vector<16x128xbf16>, vector<128x128xbf16>, vector<16x128xf32> -> vector<16x128xf32>
    %22 = arith.addf %15, %21 : vector<16x128xf32>
    %c0_39 = arith.constant 0 : index
    %c0_40 = arith.constant 0 : index
    %c2 = arith.constant 2 : index
    %c0_41 = arith.constant 0 : index
    %23 = vector.load %arg5[%c0_39, %c0_40, %c2, %c0_41] : memref<1x6x6x128xf32, #tpu.memory_space<vmem>>, vector<1x4x4x128xf32>
    %24 = vector.shape_cast %23 : vector<1x4x4x128xf32> to vector<16x128xf32>
    %25 = arith.truncf %24 : vector<16x128xf32> to vector<16x128xbf16>
    %c2_42 = arith.constant 2 : index
    %c0_43 = arith.constant 0 : index
    %c0_44 = arith.constant 0 : index
    %26 = vector.load %arg2[%c2_42, %c0_43, %c0_44] : memref<9x128x128xbf16, #tpu.memory_space<vmem>>, vector<1x128x128xbf16>
    %27 = vector.shape_cast %26 : vector<1x128x128xbf16> to vector<128x128xbf16>
    %cst_45 = arith.constant dense<0.000000e+00> : vector<16x128xf32>
    %28 = tpu.matmul %25, %27, %cst_45 {dimension_numbers = #tpu.dot_dimension_numbers<[1], [0], [0], [1], [0, 0, 1, 1], [], []>} : vector<16x128xbf16>, vector<128x128xbf16>, vector<16x128xf32> -> vector<16x128xf32>
    %29 = arith.addf %22, %28 : vector<16x128xf32>
    %c0_46 = arith.constant 0 : index
    %c1_47 = arith.constant 1 : index
    %c0_48 = arith.constant 0 : index
    %c0_49 = arith.constant 0 : index
    %30 = vector.load %arg5[%c0_46, %c1_47, %c0_48, %c0_49] : memref<1x6x6x128xf32, #tpu.memory_space<vmem>>, vector<1x4x4x128xf32>
    %31 = vector.shape_cast %30 : vector<1x4x4x128xf32> to vector<16x128xf32>
    %32 = arith.truncf %31 : vector<16x128xf32> to vector<16x128xbf16>
    %c3 = arith.constant 3 : index
    %c0_50 = arith.constant 0 : index
    %c0_51 = arith.constant 0 : index
    %33 = vector.load %arg2[%c3, %c0_50, %c0_51] : memref<9x128x128xbf16, #tpu.memory_space<vmem>>, vector<1x128x128xbf16>
    %34 = vector.shape_cast %33 : vector<1x128x128xbf16> to vector<128x128xbf16>
    %cst_52 = arith.constant dense<0.000000e+00> : vector<16x128xf32>
    %35 = tpu.matmul %32, %34, %cst_52 {dimension_numbers = #tpu.dot_dimension_numbers<[1], [0], [0], [1], [0, 0, 1, 1], [], []>} : vector<16x128xbf16>, vector<128x128xbf16>, vector<16x128xf32> -> vector<16x128xf32>
    %36 = arith.addf %29, %35 : vector<16x128xf32>
    %c0_53 = arith.constant 0 : index
    %c1_54 = arith.constant 1 : index
    %c1_55 = arith.constant 1 : index
    %c0_56 = arith.constant 0 : index
    %37 = vector.load %arg5[%c0_53, %c1_54, %c1_55, %c0_56] : memref<1x6x6x128xf32, #tpu.memory_space<vmem>>, vector<1x4x4x128xf32>
    %38 = vector.shape_cast %37 : vector<1x4x4x128xf32> to vector<16x128xf32>
    %39 = arith.truncf %38 : vector<16x128xf32> to vector<16x128xbf16>
    %c4 = arith.constant 4 : index
    %c0_57 = arith.constant 0 : index
    %c0_58 = arith.constant 0 : index
    %40 = vector.load %arg2[%c4, %c0_57, %c0_58] : memref<9x128x128xbf16, #tpu.memory_space<vmem>>, vector<1x128x128xbf16>
    %41 = vector.shape_cast %40 : vector<1x128x128xbf16> to vector<128x128xbf16>
    %cst_59 = arith.constant dense<0.000000e+00> : vector<16x128xf32>
    %42 = tpu.matmul %39, %41, %cst_59 {dimension_numbers = #tpu.dot_dimension_numbers<[1], [0], [0], [1], [0, 0, 1, 1], [], []>} : vector<16x128xbf16>, vector<128x128xbf16>, vector<16x128xf32> -> vector<16x128xf32>
    %43 = arith.addf %36, %42 : vector<16x128xf32>
    %c0_60 = arith.constant 0 : index
    %c1_61 = arith.constant 1 : index
    %c2_62 = arith.constant 2 : index
    %c0_63 = arith.constant 0 : index
    %44 = vector.load %arg5[%c0_60, %c1_61, %c2_62, %c0_63] : memref<1x6x6x128xf32, #tpu.memory_space<vmem>>, vector<1x4x4x128xf32>
    %45 = vector.shape_cast %44 : vector<1x4x4x128xf32> to vector<16x128xf32>
    %46 = arith.truncf %45 : vector<16x128xf32> to vector<16x128xbf16>
    %c5_64 = arith.constant 5 : index
    %c0_65 = arith.constant 0 : index
    %c0_66 = arith.constant 0 : index
    %47 = vector.load %arg2[%c5_64, %c0_65, %c0_66] : memref<9x128x128xbf16, #tpu.memory_space<vmem>>, vector<1x128x128xbf16>
    %48 = vector.shape_cast %47 : vector<1x128x128xbf16> to vector<128x128xbf16>
    %cst_67 = arith.constant dense<0.000000e+00> : vector<16x128xf32>
    %49 = tpu.matmul %46, %48, %cst_67 {dimension_numbers = #tpu.dot_dimension_numbers<[1], [0], [0], [1], [0, 0, 1, 1], [], []>} : vector<16x128xbf16>, vector<128x128xbf16>, vector<16x128xf32> -> vector<16x128xf32>
    %50 = arith.addf %43, %49 : vector<16x128xf32>
    %c0_68 = arith.constant 0 : index
    %c2_69 = arith.constant 2 : index
    %c0_70 = arith.constant 0 : index
    %c0_71 = arith.constant 0 : index
    %51 = vector.load %arg5[%c0_68, %c2_69, %c0_70, %c0_71] : memref<1x6x6x128xf32, #tpu.memory_space<vmem>>, vector<1x4x4x128xf32>
    %52 = vector.shape_cast %51 : vector<1x4x4x128xf32> to vector<16x128xf32>
    %53 = arith.truncf %52 : vector<16x128xf32> to vector<16x128xbf16>
    %c6 = arith.constant 6 : index
    %c0_72 = arith.constant 0 : index
    %c0_73 = arith.constant 0 : index
    %54 = vector.load %arg2[%c6, %c0_72, %c0_73] : memref<9x128x128xbf16, #tpu.memory_space<vmem>>, vector<1x128x128xbf16>
    %55 = vector.shape_cast %54 : vector<1x128x128xbf16> to vector<128x128xbf16>
    %cst_74 = arith.constant dense<0.000000e+00> : vector<16x128xf32>
    %56 = tpu.matmul %53, %55, %cst_74 {dimension_numbers = #tpu.dot_dimension_numbers<[1], [0], [0], [1], [0, 0, 1, 1], [], []>} : vector<16x128xbf16>, vector<128x128xbf16>, vector<16x128xf32> -> vector<16x128xf32>
    %57 = arith.addf %50, %56 : vector<16x128xf32>
    %c0_75 = arith.constant 0 : index
    %c2_76 = arith.constant 2 : index
    %c1_77 = arith.constant 1 : index
    %c0_78 = arith.constant 0 : index
    %58 = vector.load %arg5[%c0_75, %c2_76, %c1_77, %c0_78] : memref<1x6x6x128xf32, #tpu.memory_space<vmem>>, vector<1x4x4x128xf32>
    %59 = vector.shape_cast %58 : vector<1x4x4x128xf32> to vector<16x128xf32>
    %60 = arith.truncf %59 : vector<16x128xf32> to vector<16x128xbf16>
    %c7 = arith.constant 7 : index
    %c0_79 = arith.constant 0 : index
    %c0_80 = arith.constant 0 : index
    %61 = vector.load %arg2[%c7, %c0_79, %c0_80] : memref<9x128x128xbf16, #tpu.memory_space<vmem>>, vector<1x128x128xbf16>
    %62 = vector.shape_cast %61 : vector<1x128x128xbf16> to vector<128x128xbf16>
    %cst_81 = arith.constant dense<0.000000e+00> : vector<16x128xf32>
    %63 = tpu.matmul %60, %62, %cst_81 {dimension_numbers = #tpu.dot_dimension_numbers<[1], [0], [0], [1], [0, 0, 1, 1], [], []>} : vector<16x128xbf16>, vector<128x128xbf16>, vector<16x128xf32> -> vector<16x128xf32>
    %64 = arith.addf %57, %63 : vector<16x128xf32>
    %c0_82 = arith.constant 0 : index
    %c2_83 = arith.constant 2 : index
    %c2_84 = arith.constant 2 : index
    %c0_85 = arith.constant 0 : index
    %65 = vector.load %arg5[%c0_82, %c2_83, %c2_84, %c0_85] : memref<1x6x6x128xf32, #tpu.memory_space<vmem>>, vector<1x4x4x128xf32>
    %66 = vector.shape_cast %65 : vector<1x4x4x128xf32> to vector<16x128xf32>
    %67 = arith.truncf %66 : vector<16x128xf32> to vector<16x128xbf16>
    %c8 = arith.constant 8 : index
    %c0_86 = arith.constant 0 : index
    %c0_87 = arith.constant 0 : index
    %68 = vector.load %arg2[%c8, %c0_86, %c0_87] : memref<9x128x128xbf16, #tpu.memory_space<vmem>>, vector<1x128x128xbf16>
    %69 = vector.shape_cast %68 : vector<1x128x128xbf16> to vector<128x128xbf16>
    %cst_88 = arith.constant dense<0.000000e+00> : vector<16x128xf32>
    %70 = tpu.matmul %67, %69, %cst_88 {dimension_numbers = #tpu.dot_dimension_numbers<[1], [0], [0], [1], [0, 0, 1, 1], [], []>} : vector<16x128xbf16>, vector<128x128xbf16>, vector<16x128xf32> -> vector<16x128xf32>
    %71 = arith.addf %64, %70 : vector<16x128xf32>
    %c0_89 = arith.constant 0 : index
    %c0_90 = arith.constant 0 : index
    %72 = vector.load %arg3[%c0_89, %c0_90] : memref<1x128xf32, #tpu.memory_space<vmem>>, vector<1x128xf32>
    %73 = vector.broadcast %72 : vector<1x128xf32> to vector<16x128xf32>
    %74 = arith.addf %71, %73 : vector<16x128xf32>
    %cst_91 = arith.constant 1.000000e-01 : f32
    %75 = vector.broadcast %cst_91 : f32 to vector<16x128xf32>
    %76 = arith.mulf %75, %74 : vector<16x128xf32>
    %77 = arith.maximumf %74, %76 : vector<16x128xf32>
    %78 = vector.shape_cast %77 : vector<16x128xf32> to vector<1x16x128xf32>
    %cst_92 = arith.constant dense<0.000000e+00> : vector<1xf32>
    %79 = vector.multi_reduction <add>, %78, %cst_92 [1, 2] : vector<1x16x128xf32> to vector<1xf32>
    %80 = vector.shape_cast %79 : vector<1xf32> to vector<1x1x1xf32>
    %81 = arith.mulf %78, %78 : vector<1x16x128xf32>
    %cst_93 = arith.constant dense<0.000000e+00> : vector<1xf32>
    %82 = vector.multi_reduction <add>, %81, %cst_93 [1, 2] : vector<1x16x128xf32> to vector<1xf32>
    %83 = vector.shape_cast %82 : vector<1xf32> to vector<1x1x1xf32>
    %cst_94 = arith.constant 0.001953125 : f32
    %84 = vector.broadcast %cst_94 : f32 to vector<1x1x1xf32>
    %85 = arith.mulf %80, %84 : vector<1x1x1xf32>
    %cst_95 = arith.constant 0.001953125 : f32
    %86 = vector.broadcast %cst_95 : f32 to vector<1x1x1xf32>
    %87 = arith.mulf %83, %86 : vector<1x1x1xf32>
    %88 = arith.mulf %85, %85 : vector<1x1x1xf32>
    %89 = arith.subf %87, %88 : vector<1x1x1xf32>
    %90 = vector.broadcast %85 : vector<1x1x1xf32> to vector<1x16x128xf32>
    %91 = arith.subf %78, %90 : vector<1x16x128xf32>
    %cst_96 = arith.constant 9.99999997E-7 : f32
    %92 = vector.broadcast %cst_96 : f32 to vector<1x1x1xf32>
    %93 = arith.addf %89, %92 : vector<1x1x1xf32>
    %94 = math.rsqrt %93 : vector<1x1x1xf32>
    %95 = vector.broadcast %94 : vector<1x1x1xf32> to vector<1x16x128xf32>
    %96 = arith.mulf %91, %95 : vector<1x16x128xf32>
    %c0_97 = arith.constant 0 : index
    %c0_98 = arith.constant 0 : index
    %c0_99 = arith.constant 0 : index
    %97 = vector.load %arg4[%c0_97, %c0_98, %c0_99] : memref<1x16x128xf32, #tpu.memory_space<vmem>>, vector<1x16x128xf32>
    tpu.vector_store %arg4[%c0_97, %c0_98, %c0_99], %96 {strides = array<i32>} : memref<1x16x128xf32, #tpu.memory_space<vmem>>, vector<1x16x128xf32>,
    return
  }
  func.func @transform_0(%arg0: i32) -> (i32, i32, i32, i32) {
    %c0_i32 = arith.constant 0 : i32
    %c0_i32_0 = arith.constant 0 : i32
    %c0_i32_1 = arith.constant 0 : i32
    %c0_i32_2 = arith.constant 0 : i32
    return %arg0, %c0_i32, %c0_i32_0, %c0_i32_1 : i32, i32, i32, i32
  }
  func.func @transform_1(%arg0: i32) -> (i32, i32, i32) {
    %c0_i32 = arith.constant 0 : i32
    %c0_i32_0 = arith.constant 0 : i32
    %c0_i32_1 = arith.constant 0 : i32
    %c0_i32_2 = arith.constant 0 : i32
    return %c0_i32, %c0_i32_0, %c0_i32_1 : i32, i32, i32
  }
  func.func @transform_2(%arg0: i32) -> (i32, i32) {
    %c0_i32 = arith.constant 0 : i32
    %c0_i32_0 = arith.constant 0 : i32
    %c0_i32_1 = arith.constant 0 : i32
    return %c0_i32, %c0_i32_0 : i32, i32
  }
  func.func @transform_3(%arg0: i32) -> (i32, i32, i32) {
    %c0_i32 = arith.constant 0 : i32
    %c0_i32_0 = arith.constant 0 : i32
    %c0_i32_1 = arith.constant 0 : i32
    return %arg0, %c0_i32, %c0_i32_0 : i32, i32, i32
  }
}

</mosaic_0001>

<bundles_post_ra>
// kernel: tpu_custom_call.1
= control target key start
LH: loop header
LB: loop body
LE: loop exit
PB: predicated region body
PF: predicated region fallthrough
CT: control target
= control target key end

     0   :  { %8 = vsyncpa [#allocation4], 0  ;;  %s2408_s0 = inlined_call_operand.hbm [shape: f32[2,4,4,128], index: 0, kind: input, shape index: {}]   ;;  %s2409_s1 = inlined_call_operand.hbm [shape: bf16[9,128,128], index: 1, kind: input, shape index: {}]   ;;  %s2410_s2 = inlined_call_operand.vmem [shape: f32[1,128], index: 2, kind: input, shape index: {}]   ;;  %s2411_s3 = inlined_call_operand.hbm [shape: f32[2,16,128], index: 3, kind: output, shape index: {}]  }
   0x1   :  { %10 = vsyncpa [#allocation4 + $0x1], 0 }
   0x2   :  { %11 = vsyncpa [#allocation7], 0 }
   0x3   :  { %12 = vsyncpa [#allocation5], 0 }
   0x4   :  { %14 = vsyncpa [#allocation5 + $0x1], 0  ;;  %s2112_s12 = smov 0   ;;  %s2114_s13 = smov 0  }
   0x5   :  { %s2116_s14 = smov 0   ;;  %s2118_s15 = smov 0  }
   0x6 LB: > { %s2133_s16 = sadd.s32 4294967295, %s2081_s15   ;;  %s1452_s17 = sadd.s32 4294967294, %s2081_s15   ;;  %s2081_s15 = sphi %s2118_s15, %s2433_s15   ;;  %s2077_s14 = sphi %s2116_s14, %s2432_s14   ;;  %s2073_s13 = sphi %s2114_s13, %s2431_s13   ;;  %s2069_s12 = sphi %s2112_s12, %s2430_s12  }
   0x7   : > { %p40_p0 = scmp.ne.s32.totalorder %s2073_s13, %s2069_s12  ;;  %p2412_p1 = scmp.eq.s32.totalorder %s2133_s16, 0 }
   0x8   : > { %p112_p3 = scmp.eq.s32.totalorder %s1452_s17, 1  ;;  %p1453_p5 = scmp.ge.s32.totalorder %s2081_s15, 1 }
   0x9   : > { %p2142_p4 = por %p2412_p1, %p40_p0  ;;  %p119_p7 = scmp.lt.s32.totalorder %s2081_s15, 3 }
   0xa   : > { %p2147_p6 = por %p112_p3, %p40_p0  ;;  %s2083_s21 = smov [#allocation6]  }
   0xb   : > { %s2416_s18 = scalar_select %p2142_p4, 1, 0 }
   0xc   : > { %s2417_s19 = scalar_select %p2147_p6, 1, 0 }
   0xd   : > { %p2152_p8 = pnand %p1453_p5, %p119_p7  ;;  %s131_s22 = sshll.u32 %s2083_s21, 4  ;;  %s132_s22 = int_to_ptr.vmem [resolvable:$true] %s131_s22 }
   0xe   : > { %s2166_s24 = sadd.s32 1, %s2081_s15   ;;  %s27_s25 = sadd.s32 1, %s2077_s14 }
   0xf   : > { %s2418_s20 = scalar_select %p2152_p8, 1, 0 }
  0x10   : > { %p1812_p9 = pneg %p2152_p8  ;;  %s24_s26 = ssub.s32 %s2081_s15, %s2166_s24 }
  0x11   : > { %s1970_s27 = scalar_lea.vmem %s132_s22, 9216  ;;  %p1978_p5 = scmp.lt.s32.totalorder %s132_s22, %s132_s22 }
  0x12   : > { %p2161_p11 = pnand %p1812_p9, %p2412_p1  ;;  %p1971_p13 = scmp.ne.s32.totalorder %s132_s22, %s1970_s27 }
  0x13   : > { %p1979_p7 = scmp.lt.s32.totalorder %s1970_s27, %s1970_s27 }
  0x14   : > { %p1961_p12 = pneg %p2161_p11 }
  0x15   : > { %p1980_p10 = por %p1979_p7, %p1978_p5 }
  0x16   : > { %p1973_p0 = pnand %p1971_p13, %p1961_p12 }
  0x18   : > { %p1974_p3 = pneg %p1973_p0 }
  0x1a   : > { %p1981_p2 = pnand %p1980_p10, %p1974_p3 }
  0x1c   : > { %1984 = shalt.err (!%p1981_p2)
}
  0x1d   : > { %s2084_s28 = smov 64   ;;  %s2085_s29 = smov 4  }
  0x1e   : > { %1815 = dma.hbm_to_vmem [thread:$0]  (!%p2161_p11), %s2409_s1, 9216, %s132_s22, [#allocation7], %s2084_s28, %s2084_s28, %s2085_s29  }
  0x1f   : > { %p25_p2 = scmp.eq.s32.totalorder %s24_s26, 0  ;;  %p34_p9 = scmp.ne.s32.totalorder %s2077_s14, %s2073_s13 }
  0x20   : > { %p35_p10 = scmp.eq.s32.totalorder %s2081_s15, 0  ;;  %p1825_p12 = scmp.lt.s32.totalorder %s2081_s15, 2 }
  0x21   : > { %s2186_s5 = scalar_select %p25_p2, %s2077_s14, %s27_s25  }
  0x22   : > { %p36_p13 = por %p35_p10, %p34_p9  ;;  %p2420_p0 = scmp.eq.s32.totalorder %s2133_s16, 1 }
  0x23   : > { %s148_s7 = sand.u32 1, %s2077_s14   ;;  %s1541_s8 = sshll.u32 %s2081_s15, 8 }
  0x24   : > { %p2190_p3 = por %p2420_p0, %p34_p9  ;;  %s1456_s9 = sshll.u32 %s148_s7, 4 }
  0x25   : > { %s2199_s17 = scalar_lea.hbm %s2408_s0, %s1541_s8  ;;  %s152_s21 = scalar_lea.vmem [#allocation3], %s1456_s9 }
  0x26   : > { %s2421_s6 = scalar_select %p2190_p3, 1, 0 }
  0x27   : > { %s159_s22 = sshll.u32 %s152_s21, 4  ;;  %p2201_p11 = pnand %p1825_p12, %p36_p13  ;;  %s2205_s22 = int_to_ptr.vmem [resolvable:$true] %s159_s22 }
  0x28   : > { %s2207_s25 = scalar_lea.sflag [#allocation4], %s148_s7  ;;  %s1985_s26 = scalar_lea.hbm %s2199_s17, 256 }
  0x29   : > { %p1986_p5 = scmp.ne.s32.totalorder %s2199_s17, %s1985_s26  ;;  %p1987_p7 = pneg %p2201_p11 }
  0x2a   : > { %s1990_s4 = scalar_lea.hbm %s2408_s0, 512  ;;  %p1991_p10 = scmp.lt.s32.totalorder %s2199_s17, %s2408_s0 }
  0x2b   : > { %p1988_p2 = pnand %p1987_p7, %p1986_p5  ;;  %p1992_p12 = scmp.lt.s32.totalorder %s1990_s4, %s1985_s26 }
  0x2d   : > { %p1989_p9 = pneg %p1988_p2  ;;  %p1993_p13 = por %p1992_p12, %p1991_p10 }
  0x2f   : > { %p1994_p0 = pnand %p1993_p13, %p1989_p9 }
  0x31   : > { %1997 = shalt.err (!%p1994_p0)
}
  0x32   : > { %s1998_s7 = scalar_lea.vmem %s2205_s22, 256  ;;  %s2086_s10 = smov [#allocation3]  }
  0x33   : > { %p1999_p1 = scmp.ne.s32.totalorder %s2205_s22, %s1998_s7  ;;  %s2003_s11 = sshll.u32 %s2086_s10, 4  ;;  %s2004_s11 = int_to_ptr.vmem [resolvable:$false] %s2003_s11 }
  0x34   : > { %s2005_s21 = scalar_lea.vmem %s2004_s11, 512  ;;  %p2006_p2 = scmp.lt.s32.totalorder %s2205_s22, %s2004_s11 }
  0x35   : > { %p2001_p6 = pnand %p1999_p1, %p1987_p7  ;;  %p2007_p3 = scmp.lt.s32.totalorder %s2005_s21, %s1998_s7 }
  0x37   : > { %p2002_p5 = pneg %p2001_p6  ;;  %p2008_p4 = por %p2007_p3, %p2006_p2 }
  0x39   : > { %p2009_p8 = pnand %p2008_p4, %p2002_p5 }
  0x3b   : > { %2012 = shalt.err (!%p2009_p8)
}
  0x3c   : > { %1819 = dma.hbm_to_vmem [thread:$0]  (!%p2201_p11), %s2199_s17, 256, %s2205_s22, %s2207_s25, %s2084_s28, %s2084_s28, %s2085_s29  }
  0x3d   : > { %p2423_p1 = scmp.ne.s32.totalorder %s2418_s20, 0 }
  0x3e   : > { %s2234_s26 = sand.u32 (!%p2423_p1), 1, %s2073_s13   ;;  %p2424_p4 = scmp.ne.s32.totalorder (!%p2423_p1), %s2416_s18, 0 }
  0x3f   : > { %171 = sbr.rel (%p2423_p1) target bundleno = 631 (0x277), region = 32  ;;  %s1460_s27 = sshll.u32 (!%p2423_p1), %s2234_s26, 4 }
  0x40   : > { %s174_s30 = scalar_lea.sflag (!%p2423_p1), [#allocation4], %s2234_s26  ;;  %s2240_s23 = scalar_lea.vmem (!%p2423_p1), [#allocation3], %s1460_s27 }
  0x44   : > { %2056 = dma.done.wait (%p2424_p4), %s174_s30, 256  }
  0x45   : > { %2058 = vsyncadd (%p2424_p4), %s174_s30, 4294967040  ;;  %p2425_p6 = scmp.eq.s32.totalorder %s2133_s16, 0 }
  0x47   : > { %2060 = dma.done.wait (%p2425_p6), [#allocation7], 9216   ;;  %p2426_p8 = pmov %p2425_p6 }
  0x48   : > { %v2087_v0 = vmov 0.0   ;;  %vm2088_vm0 = vmmov 0   ;;  %v1867_v1 = vld [vmem:[#allocation6 + $0x78] sm:$0xff]   ;;  %v1869_v3 = vld [vmem:[#allocation6 + $0x70] sm:$0xff]   ;;  %v1871_v5 = vld [vmem:[#allocation6 + $0x68] sm:$0xff]   ;;  %s1542_s28 = sshll.u32 %s2133_s16, 8 }
  0x49   : > { %2062 = vsyncadd (%p2426_p8), [#allocation7], 4294958080  ;;  %1624 = vmatprep.subr.bf16.mxu0 %v2087_v0  ;;  %205 = vst [vmem:[#allocation2] sm:$0x3f] %v2087_v0  ;;  %1644 = vmatprep.subr.bf16.mxu1 %v2087_v0  ;;  %v1868_v2 = vld [vmem:[#allocation6 + $0x38] sm:$0xff]   ;;  %v1870_v4 = vld [vmem:[#allocation6 + $0x30] sm:$0xff]   ;;  %s2363_s4 = scalar_lea.hbm %s2411_s3, %s1542_s28 }
  0x4a   : > { %207 = vst [vmem:[#allocation2 + $0x28] sm:$0x3f] %v2087_v0  ;;  %209 = vst [vmem:[#allocation2 + $0x8] sm:$0x1] %v2087_v0  ;;  %1640 = vmatprep.mubr.msk.bf16.mxu0 %vm2088_vm0, %v2087_v0  ;;  %1660 = vmatprep.mubr.msk.bf16.mxu1 %vm2088_vm0, %v2087_v0  ;;  %v1872_v6 = vld [vmem:[#allocation6 + $0x28] sm:$0xff]   ;;  %v1873_v7 = vld [vmem:[#allocation6 + $0x60] sm:$0xff]  }
  0x4b   : > { %210 = vst [vmem:[#allocation2 + $0x10] sm:$0x1] %v2087_v0  ;;  %211 = vst [vmem:[#allocation2 + $0x18] sm:$0x1] %v2087_v0  ;;  %1625 = vmatpush3.bf16.msra.mxu0 %v1867_v1  ;;  %1645 = vmatpush3.bf16.msra.mxu1 %v1868_v2  ;;  %v1874_v8 = vld [vmem:[#allocation6 + $0x20] sm:$0xff]   ;;  %v1875_v9 = vld [vmem:[#allocation6 + $0x58] sm:$0xff]  }
  0x4c   : > { %212 = vst [vmem:[#allocation2 + $0x20] sm:$0x1] %v2087_v0  ;;  %213 = vst [vmem:[#allocation2 + $0xd] sm:$0x1] %v2087_v0  ;;  %1626 = vmatprep.subr.bf16.mxu0 %v2087_v0  ;;  %1646 = vmatprep.subr.bf16.mxu1 %v2087_v0  ;;  %v1876_v10 = vld [vmem:[#allocation6 + $0x18] sm:$0xff]   ;;  %v1877_v14 = vld [vmem:[#allocation6 + $0x50] sm:$0xff]  }
  0x4d   : > { %214 = vst [vmem:[#allocation2 + $0x15] sm:$0x1] %v2087_v0  ;;  %215 = vst [vmem:[#allocation2 + $0x1d] sm:$0x1] %v2087_v0  ;;  %v217_v11 = vld [vmem:[%s2240_s23] sm:$0xf] }
  0x4e   : > { %216 = vst [vmem:[#allocation2 + $0x25] sm:$0x1] %v2087_v0  ;;  %v218_v12 = vld [vmem:[%s2240_s23 + $0x4] sm:$0xf]  ;;  %v219_v13 = vld [vmem:[%s2240_s23 + $0x8] sm:$0xf] }
  0x4f   : > { %1627 = vmatpush3.bf16.msra.mxu0 %v1869_v3  ;;  %1647 = vmatpush3.bf16.msra.mxu1 %v1870_v4  ;;  %221 = vst [vmem:[#allocation2 + $0x9] sm:$0xf] %v217_v11  ;;  %222 = vst [vmem:[#allocation2 + $0x11] sm:$0xf] %v218_v12  ;;  %v1878_v15 = vld [vmem:[#allocation6 + $0x10] sm:$0xff]   ;;  %v1879_v16 = vld [vmem:[#allocation6 + $0x48] sm:$0xff]  }
  0x50   : > { %1628 = vmatprep.subr.bf16.mxu0 %v2087_v0  ;;  %1648 = vmatprep.subr.bf16.mxu1 %v2087_v0  ;;  %223 = vst [vmem:[#allocation2 + $0x19] sm:$0xf] %v219_v13  ;;  %v1880_v17 = vld [vmem:[#allocation6 + $0x8] sm:$0xff]   ;;  %v1881_v18 = vld [vmem:[#allocation6 + $0x40] sm:$0xff]   ;;  %v1887_v26 = vld [vmem:[#allocation6 + $0xb8] sm:$0xff]   ;;  %s203_s29 = scalar_lea.vmem [#allocation8], %s1460_s27 }
  0x51   : > { %v1882_v22 = vld [vmem:[#allocation6] sm:$0xff]   ;;  %v1888_v27 = vld [vmem:[#allocation6 + $0xf8] sm:$0xff]   ;;  %v1889_v28 = vld [vmem:[#allocation6 + $0xb0] sm:$0xff]   ;;  %s1369_s17 = sshll.u32 %s203_s29, 4  ;;  %s1356_s16 = scalar_lea.sflag [#allocation5], %s2234_s26  ;;  %s2365_s17 = int_to_ptr.vmem [resolvable:$true] %s1369_s17 }
  0x52   : > { %v1890_v29 = vld [vmem:[#allocation6 + $0xf0] sm:$0xff]   ;;  %v1891_v30 = vld [vmem:[#allocation6 + $0xa8] sm:$0xff]   ;;  %v1893_v33 = vld [vmem:[#allocation6 + $0xa0] sm:$0xff]   ;;  %s2013_s8 = scalar_lea.vmem %s2365_s17, 256  ;;  %p2427_p11 = scmp.ne.s32.totalorder %s2421_s6, 0 }
  0x53   : > { %1629 = vmatpush3.bf16.msra.mxu0 %v1871_v5  ;;  %1649 = vmatpush3.bf16.msra.mxu1 %v1872_v6  ;;  %v1892_v31 = vld [vmem:[#allocation6 + $0xe8] sm:$0xff]   ;;  %v1894_v34 = vld [vmem:[#allocation6 + $0xe0] sm:$0xff]   ;;  %v1895_v35 = vld [vmem:[#allocation6 + $0x98] sm:$0xff]   ;;  %p2014_p3 = scmp.ne.s32.totalorder %s2365_s17, %s2013_s8  ;;  %s2089_s9 = smov [#allocation8]  }
  0x54   : > { %1630 = vmatprep.subr.bf16.mxu0 %v2087_v0  ;;  %1650 = vmatprep.subr.bf16.mxu1 %v2087_v0  ;;  %v220_v32 = vld [vmem:[%s2240_s23 + $0xc] sm:$0xf]  ;;  %v1897_v37 = vld [vmem:[#allocation6 + $0x90] sm:$0xff]   ;;  %v1901_v42 = vld [vmem:[#allocation6 + $0x80] sm:$0xff]   ;;  %s2017_s7 = sshll.u32 %s2089_s9, 4  ;;  %s2018_s7 = int_to_ptr.vmem [resolvable:$false] %s2017_s7 }
  0x55   : > { %224 = vst [vmem:[#allocation2 + $0x21] sm:$0xf] %v220_v32  ;;  %v1896_v36 = vld [vmem:[#allocation6 + $0xd8] sm:$0xff]   ;;  %v1898_v38 = vld [vmem:[#allocation6 + $0xd0] sm:$0xff]   ;;  %v1899_v39 = vld [vmem:[#allocation6 + $0x88] sm:$0xff]   ;;  %p2015_p7 = pnand %p2014_p3, %p2427_p11  ;;  %s2019_s10 = scalar_lea.vmem %s2018_s7, 512 }
  0x56   : > { %v1883_v19 = vld [vmem:[#allocation2 + $0x1] ss:$8 sps:$4 sm:$0xff]   ;;  %v1900_v40 = vld [vmem:[#allocation6 + $0xc8] sm:$0xff]   ;;  %v1902_v46 = vld [vmem:[#allocation6 + $0xc0] sm:$0xff]   ;;  %p2020_p10 = scmp.lt.s32.totalorder %s2365_s17, %s2018_s7  ;;  %p2021_p12 = scmp.lt.s32.totalorder %s2019_s10, %s2013_s8 }
  0x57   : > { %1631 = vmatpush3.bf16.msra.mxu0 %v1873_v7  ;;  %1651 = vmatpush3.bf16.msra.mxu1 %v1874_v8  ;;  %v1884_v20 = vld [vmem:[#allocation2 + $0x11] ss:$8 sps:$4 sm:$0xff]   ;;  %v1885_v21 = vld [vmem:[#allocation2] ss:$8 sps:$4 sm:$0xff]   ;;  %p2016_p9 = pneg %p2015_p7 }
  0x58   : > { %1632 = vmatprep.subr.bf16.mxu0 %v2087_v0  ;;  %1652 = vmatprep.subr.bf16.mxu1 %v2087_v0  ;;  %v1886_v23 = vld [vmem:[#allocation2 + $0x10] ss:$8 sps:$4 sm:$0xff]   ;;  %v266_v24 = vpack.c.bf16 %v1884_v20, %v1883_v19  ;;  %v1903_v41 = vld [vmem:[#allocation2 + $0x2] ss:$8 sps:$4 sm:$0xff]   ;;  %p2022_p13 = por %p2021_p12, %p2020_p10 }
  0x59   : > { %v237_v25 = vpack.c.bf16 %v1886_v23, %v1885_v21  ;;  %v1904_v43 = vld [vmem:[#allocation2 + $0x12] ss:$8 sps:$4 sm:$0xff]   ;;  %v1905_v48 = vld [vmem:[#allocation6 + $0x138] sm:$0xff]   ;;  %v1909_v51 = vld [vmem:[#allocation6 + $0x130] sm:$0xff]  }
  0x5a   : > { %v1906_v44 = vld [vmem:[#allocation2 + $0x8] ss:$8 sps:$4 sm:$0xff]   ;;  %v474_v47 = vpack.c.bf16 %v1904_v43, %v1903_v41  ;;  %v1910_v52 = vld [vmem:[#allocation6 + $0x170] sm:$0xff]   ;;  %v1911_v53 = vld [vmem:[#allocation6 + $0x128] sm:$0xff]   ;;  %p2023_p0 = pnand %p2022_p13, %p2016_p9 }
  0x5b   : > { %1633 = vmatpush3.bf16.msra.mxu0 %v1875_v9  ;;  %1653 = vmatpush3.bf16.msra.mxu1 %v1876_v10  ;;  %v1908_v50 = vld [vmem:[#allocation6 + $0x178] sm:$0xff]   ;;  %v1912_v54 = vld [vmem:[#allocation6 + $0x168] sm:$0xff]   ;;  %v1913_v55 = vld [vmem:[#allocation6 + $0x120] sm:$0xff]  }
  0x5c   : > { %1634 = vmatprep.subr.bf16.mxu0 %v2087_v0  ;;  %1654 = vmatprep.subr.bf16.mxu1 %v2087_v0  ;;  %v1907_v45 = vld [vmem:[#allocation2 + $0x18] ss:$8 sps:$4 sm:$0xff]   ;;  %v1914_v56 = vld [vmem:[#allocation6 + $0x160] sm:$0xff]   ;;  %v1915_v57 = vld [vmem:[#allocation6 + $0x118] sm:$0xff]  }
  0x5d   : > { %v595_v49 = vpack.c.bf16 %v1907_v45, %v1906_v44  ;;  %v1916_v58 = vld [vmem:[#allocation6 + $0x158] sm:$0xff]   ;;  %v1917_v59 = vld [vmem:[#allocation6 + $0x110] sm:$0xff]   ;;  %v1919_v61 = vld [vmem:[#allocation6 + $0x108] sm:$0xff]  }
  0x5e   : > { %v1918_v60 = vld [vmem:[#allocation6 + $0x150] sm:$0xff]   ;;  %v1920_v62 = vld [vmem:[#allocation6 + $0x148] sm:$0xff]   ;;  %v1923_v63 = vld [vmem:[#allocation2 + $0x9] ss:$8 sps:$4 sm:$0xff]  }
  0x5f   : > { %1635 = vmatpush3.bf16.msra.mxu0 %v1877_v14  ;;  %1655 = vmatpush3.bf16.msra.mxu1 %v1878_v15  ;;  %v1921_v1 = vld [vmem:[#allocation6 + $0x100] sm:$0xff]   ;;  %v1924_v2 = vld [vmem:[#allocation2 + $0x19] ss:$8 sps:$4 sm:$0xff]   ;;  %v1925_v7 = vld [vmem:[#allocation6 + $0x1b8] sm:$0xff]  }
  0x60   : > { %1636 = vmatprep.subr.bf16.mxu0 %v2087_v0  ;;  %1656 = vmatprep.subr.bf16.mxu1 %v2087_v0  ;;  %v1926_v3 = vld [vmem:[#allocation2 + $0xa] ss:$8 sps:$4 sm:$0xff]   ;;  %v1927_v4 = vld [vmem:[#allocation2 + $0x1a] ss:$8 sps:$4 sm:$0xff]   ;;  %v716_v6 = vpack.c.bf16 %v1924_v2, %v1923_v63 }
  0x61   : > { %v1922_v5 = vld [vmem:[#allocation6 + $0x140] sm:$0xff]   ;;  %v837_v8 = vpack.c.bf16 %v1927_v4, %v1926_v3  ;;  %v1928_v9 = vld [vmem:[#allocation6 + $0x1f8] sm:$0xff]   ;;  %v1929_v10 = vld [vmem:[#allocation6 + $0x1b0] sm:$0xff]  }
  0x62   : > { %v1930_v11 = vld [vmem:[#allocation6 + $0x1f0] sm:$0xff]   ;;  %v1931_v12 = vld [vmem:[#allocation6 + $0x1a8] sm:$0xff]   ;;  %v1933_v14 = vld [vmem:[#allocation6 + $0x1a0] sm:$0xff]  }
  0x63   : > { %1637 = vmatpush3.bf16.msra.mxu0 %v1879_v16  ;;  %1657 = vmatpush3.bf16.msra.mxu1 %v1880_v17  ;;  %v1932_v13 = vld [vmem:[#allocation6 + $0x1e8] sm:$0xff]   ;;  %v1934_v15 = vld [vmem:[#allocation6 + $0x1e0] sm:$0xff]   ;;  %v1935_v16 = vld [vmem:[#allocation6 + $0x198] sm:$0xff]  }
  0x64   : > { %1638 = vmatprep.subr.bf16.mxu0 %v2087_v0  ;;  %1658 = vmatprep.subr.bf16.mxu1 %v2087_v0  ;;  %v1936_v17 = vld [vmem:[#allocation6 + $0x1d8] sm:$0xff]   ;;  %v1938_v19 = vld [vmem:[#allocation6 + $0x1d0] sm:$0xff]   ;;  %v1939_v20 = vld [vmem:[#allocation6 + $0x188] sm:$0xff]  }
  0x65   : > { %v1940_v21 = vld [vmem:[#allocation6 + $0x1c8] sm:$0xff]   ;;  %v1944_v23 = vld [vmem:[#allocation2 + $0x20] ss:$8 sps:$4 sm:$0xff]  }
  0x66   : > { %v1949_v32 = vld [vmem:[#allocation6 + $0x228] sm:$0xff]  }
  0x67   : > { %1639 = vmatpush3.bf16.msra.mxu0 %v1881_v18  ;;  %1659 = vmatpush3.bf16.msra.mxu1 %v1882_v22  ;;  %v1937_v18 = vld [vmem:[#allocation6 + $0x190] sm:$0xff]   ;;  %v1943_v22 = vld [vmem:[#allocation2 + $0x10] ss:$8 sps:$4 sm:$0xff]  }
  0x68   : > { %1664 = vmatprep.subr.bf16.mxu0 %v2087_v0  ;;  %1684 = vmatprep.subr.bf16.mxu1 %v2087_v0 }
  0x6a   : > { %1641 = vmatmul.mubr.bf16.vlgmr.msra.gmra.mxu0 %v266_v24  ;;  %1661 = vmatmul.mubr.bf16.vlgmr.msra.gmra.mxu1 %v237_v25  ;;  %v1941_v24 = vld [vmem:[#allocation6 + $0x180] sm:$0xff]  }
  0x6b   : > { %1665 = vmatpush3.bf16.msra.mxu0 %v1887_v26  ;;  %1685 = vmatpush3.bf16.msra.mxu1 %v1888_v27  ;;  %v1946_v25 = vld [vmem:[#allocation2 + $0x11] ss:$8 sps:$4 sm:$0xff]   ;;  %v1947_v26 = vld [vmem:[#allocation2 + $0x21] ss:$8 sps:$4 sm:$0xff]  }
  0x6c   : > { %1666 = vmatprep.subr.bf16.mxu0 %v2087_v0  ;;  %1686 = vmatprep.subr.bf16.mxu1 %v2087_v0  ;;  %v1942_v27 = vld [vmem:[#allocation6 + $0x1c0] sm:$0xff]  }
  0x6d   : > { %1680 = vmatprep.mubr.msk.bf16.mxu0 %vm2088_vm0, %v2087_v0  ;;  %1700 = vmatprep.mubr.msk.bf16.mxu1 %vm2088_vm0, %v2087_v0 }
  0x6f   : > { %1667 = vmatpush3.bf16.msra.mxu0 %v1889_v28  ;;  %1687 = vmatpush3.bf16.msra.mxu1 %v1890_v29  ;;  %v959_v28 = vpack.c.bf16 %v1944_v23, %v1943_v22  ;;  %v1945_v29 = vld [vmem:[#allocation6 + $0x238] sm:$0xff]   ;;  %v1535_v23 = vld [vmem:[%s2410_s2] ss:$0 sm:$0xff] }
  0x70   : > { %1668 = vmatprep.subr.bf16.mxu0 %v2087_v0  ;;  %1688 = vmatprep.subr.bf16.mxu1 %v2087_v0 }
  0x73   : > { %1669 = vmatpush3.bf16.msra.mxu0 %v1891_v30  ;;  %1689 = vmatpush3.bf16.msra.mxu1 %v1892_v31  ;;  %v1080_v30 = vpack.c.bf16 %v1947_v26, %v1946_v25  ;;  %v1948_v31 = vld [vmem:[#allocation6 + $0x230] sm:$0xff]  }
  0x74   : > { %1670 = vmatprep.subr.bf16.mxu0 %v2087_v0  ;;  %1690 = vmatprep.subr.bf16.mxu1 %v2087_v0 }
  0x77   : > { %1671 = vmatpush3.bf16.msra.mxu0 %v1893_v33  ;;  %1691 = vmatpush3.bf16.msra.mxu1 %v1894_v34  ;;  %v1950_v33 = vld [vmem:[#allocation6 + $0x220] sm:$0xff]   ;;  %v1951_v34 = vld [vmem:[#allocation6 + $0x218] sm:$0xff]  }
  0x78   : > { %1672 = vmatprep.subr.bf16.mxu0 %v2087_v0  ;;  %1692 = vmatprep.subr.bf16.mxu1 %v2087_v0 }
  0x7b   : > { %1673 = vmatpush3.bf16.msra.mxu0 %v1895_v35  ;;  %1693 = vmatpush3.bf16.msra.mxu1 %v1896_v36  ;;  %v1952_v35 = vld [vmem:[#allocation6 + $0x210] sm:$0xff]   ;;  %v1953_v36 = vld [vmem:[#allocation6 + $0x208] sm:$0xff]  }
  0x7c   : > { %1674 = vmatprep.subr.bf16.mxu0 %v2087_v0  ;;  %1694 = vmatprep.subr.bf16.mxu1 %v2087_v0 }
  0x7f   : > { %1675 = vmatpush3.bf16.msra.mxu0 %v1897_v37  ;;  %1695 = vmatpush3.bf16.msra.mxu1 %v1898_v38  ;;  %v1955_v37 = vld [vmem:[#allocation2 + $0x12] ss:$8 sps:$4 sm:$0xff]   ;;  %v1956_v38 = vld [vmem:[#allocation2 + $0x22] ss:$8 sps:$4 sm:$0xff]  }
  0x80   : > { %1676 = vmatprep.subr.bf16.mxu0 %v2087_v0  ;;  %1696 = vmatprep.subr.bf16.mxu1 %v2087_v0 }
  0x83   : > { %1677 = vmatpush3.bf16.msra.mxu0 %v1899_v39  ;;  %1697 = vmatpush3.bf16.msra.mxu1 %v1900_v40  ;;  %v1954_v39 = vld [vmem:[#allocation6 + $0x200] sm:$0xff]   ;;  %v1201_v40 = vpack.c.bf16 %v1956_v38, %v1955_v37 }
  0x84   : > { %1678 = vmatprep.subr.bf16.mxu0 %v2087_v0  ;;  %1698 = vmatprep.subr.bf16.mxu1 %v2087_v0 }
  0x87   : > { %1679 = vmatpush3.bf16.msra.mxu0 %v1901_v42  ;;  %1699 = vmatpush3.bf16.msra.mxu1 %v1902_v46 }
  0x88   : > { %1704 = vmatprep.subr.bf16.mxu0 %v2087_v0  ;;  %1724 = vmatprep.subr.bf16.mxu1 %v2087_v0 }
  0x8a   : > { %1681 = vmatmul.mubr.bf16.vlgmr.msra.gmra.mxu0 %v474_v47  ;;  %1701 = vmatmul.mubr.bf16.vlgmr.msra.gmra.mxu1 %v595_v49 }
  0x8b   : > { %1705 = vmatpush3.bf16.msra.mxu0 %v1905_v48  ;;  %1725 = vmatpush3.bf16.msra.mxu1 %v1908_v50 }
  0x8c   : > { %1706 = vmatprep.subr.bf16.mxu0 %v2087_v0  ;;  %1726 = vmatprep.subr.bf16.mxu1 %v2087_v0 }
  0x8d   : > { %1720 = vmatprep.mubr.msk.bf16.mxu0 %vm2088_vm0, %v2087_v0  ;;  %1740 = vmatprep.mubr.msk.bf16.mxu1 %vm2088_vm0, %v2087_v0 }
  0x8f   : > { %1707 = vmatpush3.bf16.msra.mxu0 %v1909_v51  ;;  %1727 = vmatpush3.bf16.msra.mxu1 %v1910_v52 }
  0x90   : > { %1708 = vmatprep.subr.bf16.mxu0 %v2087_v0  ;;  %1728 = vmatprep.subr.bf16.mxu1 %v2087_v0 }
  0x93   : > { %1709 = vmatpush3.bf16.msra.mxu0 %v1911_v53  ;;  %1729 = vmatpush3.bf16.msra.mxu1 %v1912_v54 }
  0x94   : > { %1710 = vmatprep.subr.bf16.mxu0 %v2087_v0  ;;  %1730 = vmatprep.subr.bf16.mxu1 %v2087_v0 }
  0x97   : > { %1711 = vmatpush3.bf16.msra.mxu0 %v1913_v55  ;;  %1731 = vmatpush3.bf16.msra.mxu1 %v1914_v56 }
  0x98   : > { %1712 = vmatprep.subr.bf16.mxu0 %v2087_v0  ;;  %1732 = vmatprep.subr.bf16.mxu1 %v2087_v0 }
  0x9b   : > { %1713 = vmatpush3.bf16.msra.mxu0 %v1915_v57  ;;  %1733 = vmatpush3.bf16.msra.mxu1 %v1916_v58 }
  0x9c   : > { %1714 = vmatprep.subr.bf16.mxu0 %v2087_v0  ;;  %1734 = vmatprep.subr.bf16.mxu1 %v2087_v0 }
  0x9f   : > { %1715 = vmatpush3.bf16.msra.mxu0 %v1917_v59  ;;  %1735 = vmatpush3.bf16.msra.mxu1 %v1918_v60 }
  0xa0   : > { %1716 = vmatprep.subr.bf16.mxu0 %v2087_v0  ;;  %1736 = vmatprep.subr.bf16.mxu1 %v2087_v0 }
  0xa3   : > { %1717 = vmatpush3.bf16.msra.mxu0 %v1919_v61  ;;  %1737 = vmatpush3.bf16.msra.mxu1 %v1920_v62 }
  0xa4   : > { %1718 = vmatprep.subr.bf16.mxu0 %v2087_v0  ;;  %1738 = vmatprep.subr.bf16.mxu1 %v2087_v0 }
  0xa7   : > { %1719 = vmatpush3.bf16.msra.mxu0 %v1921_v1  ;;  %1739 = vmatpush3.bf16.msra.mxu1 %v1922_v5 }
  0xa8   : > { %1744 = vmatprep.subr.bf16.mxu0 %v2087_v0  ;;  %1764 = vmatprep.subr.bf16.mxu1 %v2087_v0 }
  0xaa   : > { %1721 = vmatmul.mubr.bf16.vlgmr.msra.gmra.mxu0 %v716_v6  ;;  %1741 = vmatmul.mubr.bf16.vlgmr.msra.gmra.mxu1 %v837_v8 }
  0xab   : > { %1745 = vmatpush3.bf16.msra.mxu0 %v1925_v7  ;;  %1765 = vmatpush3.bf16.msra.mxu1 %v1928_v9 }
  0xac   : > { %1746 = vmatprep.subr.bf16.mxu0 %v2087_v0  ;;  %1766 = vmatprep.subr.bf16.mxu1 %v2087_v0 }
  0xad   : > { %1760 = vmatprep.mubr.msk.bf16.mxu0 %vm2088_vm0, %v2087_v0  ;;  %1780 = vmatprep.mubr.msk.bf16.mxu1 %vm2088_vm0, %v2087_v0 }
  0xaf   : > { %1747 = vmatpush3.bf16.msra.mxu0 %v1929_v10  ;;  %1767 = vmatpush3.bf16.msra.mxu1 %v1930_v11 }
  0xb0   : > { %1748 = vmatprep.subr.bf16.mxu0 %v2087_v0  ;;  %1768 = vmatprep.subr.bf16.mxu1 %v2087_v0 }
  0xb3   : > { %1749 = vmatpush3.bf16.msra.mxu0 %v1931_v12  ;;  %1769 = vmatpush3.bf16.msra.mxu1 %v1932_v13 }
  0xb4   : > { %1750 = vmatprep.subr.bf16.mxu0 %v2087_v0  ;;  %1770 = vmatprep.subr.bf16.mxu1 %v2087_v0 }
  0xb7   : > { %1751 = vmatpush3.bf16.msra.mxu0 %v1933_v14  ;;  %1771 = vmatpush3.bf16.msra.mxu1 %v1934_v15 }
  0xb8   : > { %1752 = vmatprep.subr.bf16.mxu0 %v2087_v0  ;;  %1772 = vmatprep.subr.bf16.mxu1 %v2087_v0 }
  0xbb   : > { %1753 = vmatpush3.bf16.msra.mxu0 %v1935_v16  ;;  %1773 = vmatpush3.bf16.msra.mxu1 %v1936_v17 }
  0xbc   : > { %1754 = vmatprep.subr.bf16.mxu0 %v2087_v0  ;;  %1774 = vmatprep.subr.bf16.mxu1 %v2087_v0 }
  0xbf   : > { %1755 = vmatpush3.bf16.msra.mxu0 %v1937_v18  ;;  %1775 = vmatpush3.bf16.msra.mxu1 %v1938_v19 }
  0xc0   : > { %1756 = vmatprep.subr.bf16.mxu0 %v2087_v0  ;;  %1776 = vmatprep.subr.bf16.mxu1 %v2087_v0 }
  0xc3   : > { %1757 = vmatpush3.bf16.msra.mxu0 %v1939_v20  ;;  %1777 = vmatpush3.bf16.msra.mxu1 %v1940_v21 }
  0xc4   : > { %1758 = vmatprep.subr.bf16.mxu0 %v2087_v0  ;;  %1778 = vmatprep.subr.bf16.mxu1 %v2087_v0 }
  0xc7   : > { %1759 = vmatpush3.bf16.msra.mxu0 %v1941_v24  ;;  %1779 = vmatpush3.bf16.msra.mxu1 %v1942_v27 }
  0xc8   : > { %1784 = vmatprep.subr.bf16.mxu0 %v2087_v0 }
  0xca   : > { %1761 = vmatmul.mubr.bf16.vlgmr.msra.gmra.mxu0 %v959_v28  ;;  %1781 = vmatmul.mubr.bf16.vlgmr.msra.gmra.mxu1 %v1080_v30 }
  0xcb   : > { %1785 = vmatpush3.bf16.msra.mxu0 %v1945_v29  ;;  %1800 = vmatprep.mubr.msk.bf16.mxu0 %vm2088_vm0, %v2087_v0 }
  0xcc   : > { %1786 = vmatprep.subr.bf16.mxu0 %v2087_v0 }
  0xcf   : > { %1787 = vmatpush3.bf16.msra.mxu0 %v1948_v31 }
  0xd0   : > { %1788 = vmatprep.subr.bf16.mxu0 %v2087_v0 }
  0xd3   : > { %1789 = vmatpush3.bf16.msra.mxu0 %v1949_v32 }
  0xd4   : > { %1790 = vmatprep.subr.bf16.mxu0 %v2087_v0 }
  0xd7   : > { %1791 = vmatpush3.bf16.msra.mxu0 %v1950_v33 }
  0xd8   : > { %1792 = vmatprep.subr.bf16.mxu0 %v2087_v0 }
  0xdb   : > { %1793 = vmatpush3.bf16.msra.mxu0 %v1951_v34 }
  0xdc   : > { %1794 = vmatprep.subr.bf16.mxu0 %v2087_v0 }
  0xdf   : > { %1795 = vmatpush3.bf16.msra.mxu0 %v1952_v35 }
  0xe0   : > { %1796 = vmatprep.subr.bf16.mxu0 %v2087_v0 }
  0xe3   : > { %1797 = vmatpush3.bf16.msra.mxu0 %v1953_v36 }
  0xe4   : > { %1798 = vmatprep.subr.bf16.mxu0 %v2087_v0 }
  0xe7   : > { %1799 = vmatpush3.bf16.msra.mxu0 %v1954_v39 }
  0xea   : > { %1801 = vmatmul.mubr.bf16.vlgmr.msra.gmra.mxu0 %v1201_v40 }
 0x12a   : > { %v366_v41 = vpop.f32.mrf.mxu0  ;;  %v455_v42 = vpop.f32.mrf.mxu1 }
 0x12b   : > { %v456_v43 = vadd.f32 %v455_v42, %v366_v41 }
 0x12c   : > { %v1642_v44 = vpop.f32.mrf.mxu0  ;;  %v1662_v45 = vpop.f32.mrf.mxu1 }
 0x12e   : > { %v369_v46 = vpop.f32.mrf.mxu0  ;;  %v458_v47 = vpop.f32.mrf.mxu1 }
 0x12f   : > { %v459_v48 = vadd.f32 %v458_v47, %v369_v46 }
 0x130   : > { %v1643_v49 = vpop.f32.mrf.mxu0  ;;  %v1663_v50 = vpop.f32.mrf.mxu1 }
 0x14a   : > { %v574_v51 = vpop.f32.mrf.mxu0  ;;  %v695_v53 = vpop.f32.mrf.mxu1 }
 0x14b   : > { %v581_v52 = vadd.f32 %v574_v51, %v456_v43 }
 0x14c   : > { %v1682_v54 = vpop.f32.mrf.mxu0  ;;  %v1702_v56 = vpop.f32.mrf.mxu1 }
 0x14d   : > { %v702_v55 = vadd.f32 %v695_v53, %v581_v52 }
 0x14e   : > { %v577_v0 = vpop.f32.mrf.mxu0  ;;  %v698_v58 = vpop.f32.mrf.mxu1 }
 0x14f   : > { %v582_v57 = vadd.f32 %v577_v0, %v459_v48 }
 0x150   : > { %v1683_v59 = vpop.f32.mrf.mxu0  ;;  %v1703_v61 = vpop.f32.mrf.mxu1 }
 0x151   : > { %v703_v60 = vadd.f32 %v698_v58, %v582_v57 }
 0x16a   : > { %v816_v62 = vpop.f32.mrf.mxu0  ;;  %v937_v63 = vpop.f32.mrf.mxu1 }
 0x16b   : > { %v823_v15 = vadd.f32 %v816_v62, %v702_v55 }
 0x16c   : > { %v1722_v1 = vpop.f32.mrf.mxu0  ;;  %v1742_v2 = vpop.f32.mrf.mxu1 }
 0x16d   : > { %v944_v16 = vadd.f32 %v937_v63, %v823_v15 }
 0x16e   : > { %v819_v3 = vpop.f32.mrf.mxu0  ;;  %v940_v4 = vpop.f32.mrf.mxu1 }
 0x16f   : > { %v824_v17 = vadd.f32 %v819_v3, %v703_v60 }
 0x170   : > { %v1723_v5 = vpop.f32.mrf.mxu0  ;;  %v1743_v6 = vpop.f32.mrf.mxu1 }
 0x171   : > { %v945_v19 = vadd.f32 %v940_v4, %v824_v17 }
 0x18a   : > { %v1059_v7 = vpop.f32.mrf.mxu0  ;;  %v1180_v8 = vpop.f32.mrf.mxu1 }
 0x18b   : > { %v1066_v18 = vadd.f32 %v1059_v7, %v944_v16 }
 0x18c   : > { %v1762_v9 = vpop.f32.mrf.mxu0  ;;  %v1782_v10 = vpop.f32.mrf.mxu1 }
 0x18d   : > { %v1187_v20 = vadd.f32 %v1180_v8, %v1066_v18 }
 0x18e   : > { %v1062_v11 = vpop.f32.mrf.mxu0  ;;  %v1183_v12 = vpop.f32.mrf.mxu1 }
 0x18f   : > { %v1067_v21 = vadd.f32 %v1062_v11, %v945_v19 }
 0x190   : > { %v1763_v13 = vpop.f32.mrf.mxu0  ;;  %v1783_v14 = vpop.f32.mrf.mxu1 }
 0x191   : > { %v1188_v26 = vadd.f32 %v1183_v12, %v1067_v21 }
 0x1aa   : > { %v1301_v22 = vpop.f32.mrf.mxu0 }
 0x1ab   : > { %v1308_v24 = vadd.f32 %v1301_v22, %v1187_v20 }
 0x1ac   : > { %v1802_v25 = vpop.f32.mrf.mxu0 }
 0x1ad   : > { %v1317_v27 = vadd.f32 %v1535_v23, %v1308_v24 }
 0x1ae   : > { %v1304_v28 = vpop.f32.mrf.mxu0 }
 0x1af   : > { %v1309_v29 = vadd.f32 %v1304_v28, %v1188_v26  ;;  %v1319_v31 = vmul.f32 0.1, %v1317_v27 }
 0x1b0   : > { %v1803_v30 = vpop.f32.mrf.mxu0 }
 0x1b1   : > { %v1318_v32 = vadd.f32 %v1535_v23, %v1309_v29  ;;  %v1321_v34 = vmax.f32 %v1317_v27, %v1319_v31 }
 0x1b3   : > { %v1320_v33 = vmul.f32 0.1, %v1318_v32  ;;  %v1332_v38 = vmul.f32 %v1321_v34, %v1321_v34 }
 0x1b5   : > { %v1322_v35 = vmax.f32 %v1318_v32, %v1320_v33 }
 0x1b7   : > { %v1323_v36 = vadd.f32 %v1322_v35, %v1321_v34  ;;  %v1333_v37 = vmul.f32 %v1322_v35, %v1322_v35 }
 0x1b9   : > { %1324 = vadd.xlane.f32.xlu0 %v1323_v36  ;;  %v1334_v39 = vadd.f32 %v1333_v37, %v1332_v38 }
 0x1bd   : > { %1335 = vadd.xlane.f32.xlu0 %v1334_v39 }
 0x242   : > { %v1325_v40 = vpop.xlane.xlu0 %1324 }
 0x243   : > { %v1326_v41 = vrot.slane %v1325_v40, 4 }
 0x245   : > { %v1327_v42 = vadd.f32 %v1326_v41, %v1325_v40 }
 0x246   : > { %v1336_v43 = vpop.xlane.xlu0 %1335 }
 0x247   : > { %v1328_v44 = vrot.slane %v1327_v42, 2  ;;  %v1337_v45 = vrot.slane %v1336_v43, 4 }
 0x249   : > { %v1329_v46 = vadd.f32 %v1328_v44, %v1327_v42  ;;  %v1338_v47 = vadd.f32 %v1337_v45, %v1336_v43 }
 0x24b   : > { %v1330_v48 = vrot.slane %v1329_v46, 1  ;;  %v1339_v49 = vrot.slane %v1338_v47, 2 }
 0x24d   : > { %v1331_v50 = vadd.f32 %v1330_v48, %v1329_v46  ;;  %v1340_v51 = vadd.f32 %v1339_v49, %v1338_v47 }
 0x24f   : > { %v1343_v52 = vmul.f32 0.001953125, %v1331_v50  ;;  %v1341_v53 = vrot.slane %v1340_v51, 1 }
 0x251   : > { %v1342_v54 = vadd.f32 %v1341_v53, %v1340_v51  ;;  %v1345_v55 = vmul.f32 %v1343_v52, %v1343_v52  ;;  %v1347_v58 = vsub.f32 %v1321_v34, %v1343_v52  ;;  %v1348_v59 = vsub.f32 %v1322_v35, %v1343_v52 }
 0x253   : > { %v1344_v56 = vmul.f32 0.001953125, %v1342_v54 }
 0x255   : > { %v1346_v0 = vsub.f32 %v1344_v56, %v1345_v55 }
 0x257   : > { %v1349_v57 = vadd.f32 1e-06, %v1346_v0 }
 0x259   : > { %1957 = vrsqrt.f32 %v1349_v57 }
 0x266   : > { %v1958_v60 = vpop.eup %1957 }
 0x267   : > { %v1351_v61 = vmul.f32 %v1958_v60, %v1347_v58  ;;  %v1352_v62 = vmul.f32 %v1958_v60, %v1348_v59 }
 0x269   : > { %1353 = vst [vmem:[%s203_s29] sm:$0xff] %v1351_v61  ;;  %1354 = vst [vmem:[%s203_s29 + $0x8] sm:$0xff] %v1352_v62 }
 0x26a   : > { %2026 = shalt.err (!%p2023_p0)
}
 0x26b   : > { %s2027_s11 = scalar_lea.hbm %s2363_s4, 256  ;;  %s2031_s30 = scalar_lea.hbm %s2411_s3, 512 }
 0x26c   : > { %p2028_p5 = scmp.ne.s32.totalorder %s2363_s4, %s2027_s11  ;;  %p2032_p4 = scmp.lt.s32.totalorder %s2363_s4, %s2411_s3 }
 0x26d   : > { %p2033_p6 = scmp.lt.s32.totalorder %s2031_s30, %s2027_s11 }
 0x26e   : > { %p2029_p2 = pnand %p2028_p5, %p2427_p11 }
 0x26f   : > { %p2034_p8 = por %p2033_p6, %p2032_p4 }
 0x270   : > { %p2030_p1 = pneg %p2029_p2 }
 0x272   : > { %p2035_p3 = pnand %p2034_p8, %p2030_p1 }
 0x274   : > { %2038 = shalt.err (!%p2035_p3)
}
 0x275   : > { %s2090_s20 = smov 128   ;;  %s2091_s28 = smov 8  }
 0x276   : > { %1810 = dma.vmem_to_hbm [thread:$0]  (%p2427_p11), %s2365_s17, 256, %s2363_s4, %s1356_s16, %s2090_s20, %s2090_s20, %s2091_s28  }
 0x277 PF: > { %s1384_s29 = sand.u32 1, %s2069_s12   ;;  %p2428_p7 = scmp.ne.s32.totalorder %s2417_s19, 0 }
 0x278   : > { %p2429_p9 = scmp.ge.s32.totalorder %s2081_s15, 2  ;;  %s1385_s22 = scalar_lea.sflag [#allocation5], %s1384_s29 }
 0x27a   : > { %p1821_p10 = pnand %p2429_p9, %p2428_p7 }
 0x27c   : > { %p1822_p12 = pneg %p1821_p10 }
 0x27e   : > { %2064 = dma.done.wait (%p1822_p12), %s1385_s22, 256  }
 0x27f   : > { %2066 = vsyncadd (%p1822_p12), %s1385_s22, 4294967040  ;;  %p17_p13 = scmp.ge.s32.totalorder %s2166_s24, 4   ;;  %s2430_s12 = smov %s2073_s13 }
 0x280   : > { %s2431_s13 = smov %s2077_s14  ;;  %s2432_s14 = smov %s2186_s5 }
 0x281   : > { %s2433_s15 = smov %s2166_s24  ;;  %19 = sbr.rel (!%p17_p13) target bundleno = 6 (0x6), region = 92 }
 0x286   :  { %1390 = vsyncpa [#allocation4], 1 }
 0x287   :  { %1392 = vsyncpa [#allocation4 + $0x1], 1 }
 0x288   :  { %1393 = vsyncpa [#allocation7], 1 }
 0x289   :  { %1394 = vsyncpa [#allocation5], 1 }
 0x28a   :  { %1396 = vsyncpa [#allocation5 + $0x1], 1 }

</bundles_post_ra>
